<compile_context>
chip_gen: v6e
topology: v6e:2x2x1
jax: 0.10.0
libtpu: 0.0.40
codegen_flags: <defaults>
</compile_context>

<pallas_src>
import functools

import jax
import jax.numpy as jnp
from jax import lax
from jax.experimental import pallas as pl
from jax.experimental.pallas import tpu as pltpu


def _vmem_capacity_bytes() -> int:
    """Per-core VMEM capacity; conservative fallback (v7x = 64 MiB) if query fails."""
    try:
        return int(pltpu.get_tpu_info().vmem_capacity_bytes)
    except Exception:
        return 64 * 1024 * 1024


def _pick_tile_b(batch, num_classes, in_itemsize, vmem_cap, max_tile_b=1024):
    """Largest batch tile (multiple of 8) whose double-buffered input stream plus
    in-kernel f32 temporaries fit comfortably in this generation's VMEM."""
    # 2x double-buffered input rows + ~4 live f32 (tile_b, K) temporaries.
    per_row_bytes = num_classes * (2 * in_itemsize + 4 * 4)
    budget = int(vmem_cap * 0.6)
    tile_b = budget // max(per_row_bytes, 1)
    tile_b = min(tile_b, max_tile_b, batch)
    tile_b = max(8, (tile_b // 8) * 8)
    return tile_b


def _ce_label_smooth_kernel(x_ref, t_ref, out_ref, *, epsilon, num_classes,
                            batch_size, tile_b):
    """One batch tile: fused logsumexp + smoothed-CE partial sum (no accumulator)."""
    i = pl.program_id(0)

    x = x_ref[...].astype(jnp.float32)                          # (TB, K)
    t = t_ref[...]                                              # (TB, 1) int32

    # Numerically stable logsumexp per row.
    m = jnp.max(x, axis=-1, keepdims=True)                      # (TB, 1)
    s = jnp.sum(jnp.exp(x - m), axis=-1, keepdims=True)         # (TB, 1)
    lse = m + jnp.log(s)                                        # (TB, 1)

    # Single weighted reduce: w_k = eps/K + (1-eps)*[k == target], sum_k w_k*x_k.
    col = lax.broadcasted_iota(jnp.int32, x.shape, 1)           # (TB, K)
    w = jnp.where(col == t,
                  (1.0 - epsilon) + epsilon / num_classes,
                  epsilon / num_classes)
    wx = jnp.sum(w * x, axis=-1, keepdims=True)                 # (TB, 1)

    # loss_row = lse - sum_k w_k * x_k  ==  -sum_k smoothed_k * log_probs_k
    per_row = lse - wx

    # Zero out rows that are batch padding.
    row_ids = i * tile_b + lax.broadcasted_iota(jnp.int32, (tile_b, 1), 0)
    per_row = jnp.where(row_ids < batch_size, per_row, 0.0)

    out_ref[...] = jnp.sum(per_row).reshape(1, 1, 1)


def cross_entropy_label_smooth(inputs, targets, *, epsilon=0.1, tile_b=None):
    """inputs: (B, K) float logits (f32 or bf16 - bf16 halves HBM traffic);
    targets: (B,) int class indices. Returns scalar f32 loss."""
    B, K = inputs.shape
    itemsize = jnp.dtype(inputs.dtype).itemsize
    vmem_cap = _vmem_capacity_bytes()
    if tile_b is None:
        tile_b = _pick_tile_b(B, K, itemsize, vmem_cap)
    # TODO(synk): for vocab-scale K where even an 8-row tile overflows VMEM, add a
    # second grid axis over K with an online (running max / running sum-exp) LSE.

    num_tiles = -(-B // tile_b)
    B_pad = num_tiles * tile_b
    if B_pad != B:
        inputs = jnp.pad(inputs, ((0, B_pad - B), (0, 0)))
        targets = jnp.pad(targets, (0, B_pad - B))
    targets_2d = targets.astype(jnp.int32).reshape(B_pad, 1)

    kernel = functools.partial(
        _ce_label_smooth_kernel,
        epsilon=float(epsilon),
        num_classes=K,
        batch_size=B,
        tile_b=tile_b,
    )

    partials = pl.pallas_call(
        kernel,
        out_shape=jax.ShapeDtypeStruct((num_tiles, 1, 1), jnp.float32),
        grid_spec=pltpu.PrefetchScalarGridSpec(
            num_scalar_prefetch=0,
            grid=(num_tiles,),
            in_specs=[
                pl.BlockSpec((tile_b, K), lambda i: (i, 0)),    # logits tile
                pl.BlockSpec((tile_b, 1), lambda i: (i, 0)),    # targets tile
            ],
            out_specs=pl.BlockSpec((1, 1, 1), lambda i: (i, 0, 0)),  # per-tile partial
        ),
        compiler_params=pltpu.CompilerParams(
            dimension_semantics=("parallel",),   # independent tiles -> megacore OK
            vmem_limit_bytes=int(vmem_cap * 3 // 4),
        ),
        cost_estimate=pl.CostEstimate(
            flops=8 * B_pad * K,
            transcendentals=B_pad * K + B_pad,
            bytes_accessed=B_pad * K * itemsize + B_pad * 4 + num_tiles * 4,
        ),
    )(inputs, targets_2d)

    return jnp.sum(partials) / jnp.float32(B)


def _reference(inputs, targets, epsilon=0.1):
    """Pure-JAX reference mirroring the PyTorch module."""
    _, K = inputs.shape
    log_probs = jax.nn.log_softmax(inputs.astype(jnp.float32), axis=1)
    onehot = jax.nn.one_hot(targets, K, dtype=jnp.float32)
    smoothed = (1.0 - epsilon) * onehot + epsilon / K
    return (-smoothed * log_probs).mean(0).sum()


if __name__ == "__main__":
    key = jax.random.PRNGKey(0)
    k1, k2, k3, k4 = jax.random.split(key, 4)

    # Test 1: small f32 case matching the module (batch=16 logits over 32 classes).
    B, K = 16, 32
    inputs = jax.random.normal(k1, (B, K), dtype=jnp.float32)
    targets = jax.random.randint(k2, (B,), 0, K, dtype=jnp.int32)

    loss = jax.block_until_ready(cross_entropy_label_smooth(inputs, targets, epsilon=0.1))
    ref = _reference(inputs, targets, epsilon=0.1)
    assert jnp.allclose(loss, ref, rtol=1e-4, atol=1e-4), (loss, ref)

    # Test 2: bf16 streaming path, non-128-aligned K, and batch padding over 2 tiles.
    B2, K2 = 20, 1000
    inputs2 = jax.random.normal(k3, (B2, K2), dtype=jnp.float32).astype(jnp.bfloat16)
    targets2 = jax.random.randint(k4, (B2,), 0, K2, dtype=jnp.int32)

    loss2 = jax.block_until_ready(cross_entropy_label_smooth(inputs2, targets2, epsilon=0.1))
    ref2 = _reference(inputs2, targets2, epsilon=0.1)
    assert jnp.allclose(loss2, ref2, rtol=1e-3, atol=1e-3), (loss2, ref2)

    print("KERNEL_OK")
</pallas_src>

<mosaic_0001>
module attributes {stable_mosaic.version = 11 : i64} {
  func.func @_ce_label_smooth_kernel(%arg0: i32, %arg1: memref<16x32xf32, #tpu.memory_space<vmem>>, %arg2: memref<16x1xi32, #tpu.memory_space<vmem>>, %arg3: memref<1x1x1xf32, #tpu.memory_space<vmem>>) attributes {dimension_semantics = [#tpu.dimension_semantics<parallel>], iteration_bounds = array<i64: 1>, scalar_prefetch = 0 : i64, scratch_operands = 0 : i64, tpu.core_type = #tpu.core_type<tc>, window_params = [{transform_indices = @transform_0, window_bounds = array<i64: 16, 32>}, {transform_indices = @transform_1, window_bounds = array<i64: 16, 1>}, {transform_indices = @transform_2, window_bounds = array<i64: 1, 1, 1>}]} {
    %c0 = arith.constant 0 : index
    %c0_0 = arith.constant 0 : index
    %0 = vector.load %arg1[%c0, %c0_0] : memref<16x32xf32, #tpu.memory_space<vmem>>, vector<16x32xf32>
    %c0_1 = arith.constant 0 : index
    %c0_2 = arith.constant 0 : index
    %1 = vector.load %arg2[%c0_1, %c0_2] : memref<16x1xi32, #tpu.memory_space<vmem>>, vector<16x1xi32>
    %cst = arith.constant dense<0xFF800000> : vector<16xf32>
    %2 = vector.multi_reduction <maximumf>, %0, %cst [1] : vector<16x32xf32> to vector<16xf32>
    %3 = vector.shape_cast %2 : vector<16xf32> to vector<16x1xf32>
    %4 = vector.broadcast %3 : vector<16x1xf32> to vector<16x32xf32>
    %5 = arith.subf %0, %4 : vector<16x32xf32>
    %6 = math.exp %5 : vector<16x32xf32>
    %cst_3 = arith.constant dense<0.000000e+00> : vector<16xf32>
    %7 = vector.multi_reduction <add>, %6, %cst_3 [1] : vector<16x32xf32> to vector<16xf32>
    %8 = vector.shape_cast %7 : vector<16xf32> to vector<16x1xf32>
    %9 = math.log %8 : vector<16x1xf32>
    %10 = arith.addf %3, %9 : vector<16x1xf32>
    %11 = tpu.iota {dimensions = array<i32: 1>} : vector<16x32xi32>
    %12 = vector.broadcast %1 : vector<16x1xi32> to vector<16x32xi32>
    %13 = arith.cmpi eq, %11, %12 : vector<16x32xi32>
    %cst_4 = arith.constant 0.903124988 : f32
    %cst_5 = arith.constant 3.125000e-03 : f32
    %14 = vector.broadcast %cst_4 : f32 to vector<16x32xf32>
    %15 = vector.broadcast %cst_5 : f32 to vector<16x32xf32>
    %16 = arith.select %13, %14, %15 : vector<16x32xi1>, vector<16x32xf32>
    %17 = arith.mulf %16, %0 : vector<16x32xf32>
    %cst_6 = arith.constant dense<0.000000e+00> : vector<16xf32>
    %18 = vector.multi_reduction <add>, %17, %cst_6 [1] : vector<16x32xf32> to vector<16xf32>
    %19 = vector.shape_cast %18 : vector<16xf32> to vector<16x1xf32>
    %20 = arith.subf %10, %19 : vector<16x1xf32>
    %c16_i32 = arith.constant 16 : i32
    %21 = arith.muli %arg0, %c16_i32 : i32
    %22 = tpu.iota {dimensions = array<i32: 0>} : vector<16x1xi32>
    %23 = vector.broadcast %21 : i32 to vector<16x1xi32>
    %24 = arith.addi %23, %22 : vector<16x1xi32>
    %c16_i32_7 = arith.constant 16 : i32
    %25 = vector.broadcast %c16_i32_7 : i32 to vector<16x1xi32>
    %26 = arith.cmpi slt, %24, %25 : vector<16x1xi32>
    %cst_8 = arith.constant 0.000000e+00 : f32
    %27 = vector.broadcast %cst_8 : f32 to vector<16x1xf32>
    %28 = arith.select %26, %20, %27 : vector<16x1xi1>, vector<16x1xf32>
    %29 = vector.shape_cast %28 : vector<16x1xf32> to vector<1x16x1xf32>
    %cst_9 = arith.constant dense<0.000000e+00> : vector<1xf32>
    %30 = vector.multi_reduction <add>, %29, %cst_9 [1, 2] : vector<1x16x1xf32> to vector<1xf32>
    %31 = vector.shape_cast %30 : vector<1xf32> to vector<1x1x1xf32>
    %32 = vector.extract %31[0, 0, 0] : f32 from vector<1x1x1xf32>
    %33 = vector.broadcast %32 : f32 to vector<1x1x1xf32>
    %c0_10 = arith.constant 0 : index
    %c0_11 = arith.constant 0 : index
    %c0_12 = arith.constant 0 : index
    %34 = vector.load %arg3[%c0_10, %c0_11, %c0_12] : memref<1x1x1xf32, #tpu.memory_space<vmem>>, vector<1x1x1xf32>
    tpu.vector_store %arg3[%c0_10, %c0_11, %c0_12], %33 {strides = array<i32>} : memref<1x1x1xf32, #tpu.memory_space<vmem>>, vector<1x1x1xf32>,
    return
  }
  func.func @transform_0(%arg0: i32) -> (i32, i32) {
    %c0_i32 = arith.constant 0 : i32
    %c0_i32_0 = arith.constant 0 : i32
    return %arg0, %c0_i32 : i32, i32
  }
  func.func @transform_1(%arg0: i32) -> (i32, i32) {
    %c0_i32 = arith.constant 0 : i32
    %c0_i32_0 = arith.constant 0 : i32
    return %arg0, %c0_i32 : i32, i32
  }
  func.func @transform_2(%arg0: i32) -> (i32, i32, i32) {
    %c0_i32 = arith.constant 0 : i32
    %c0_i32_0 = arith.constant 0 : i32
    %c0_i32_1 = arith.constant 0 : i32
    return %arg0, %c0_i32, %c0_i32_0 : i32, i32, i32
  }
}

</mosaic_0001>

<bundles_post_ra>
// kernel: tpu_custom_call.1
= control target key start
LH: loop header
LB: loop body
LE: loop exit
PB: predicated region body
PF: predicated region fallthrough
CT: control target
= control target key end

     0   :  { %vm16_vm0 = vcmask 261120   ;;  %v141_v4 = vmov 0   ;;  %s180_s0 = inlined_call_operand.vmem [shape: f32[16,32], index: 0, kind: input, shape index: {}]   ;;  %s181_s1 = inlined_call_operand.vmem [shape: s32[16,1], index: 1, kind: input, shape index: {}]   ;;  %s182_s2 = inlined_call_operand.hbm [shape: f32[1,1,1], index: 2, kind: output, shape index: {}]  }
   0x1   :  { %v12_v0 = vld [vmem:[%s180_s0] sm:$0xff]  ;;  %v13_v1 = vld [vmem:[%s180_s0 + $0x8] sm:$0xff]  ;;  %109 = vset.pattern.permute.xlu1 %v141_v4  ;;  %110 = vset.pattern.permute.xlu0 %v141_v4 }
   0x2   :  { %v14_v2 = vld [vmem:[%s181_s1] sm:$0xff]  ;;  %v17_v3 = vsel %vm16_vm0, %v12_v0, -inf }
   0x3   :  { %7 = vsyncpa [#allocation3], 0  ;;  %18 = vmax.xlane.f32.xlu0 %v17_v3  ;;  %44 = vperm.xlu1 %109, %v14_v2   ;;  %v20_v5 = vsel %vm16_vm0, %v13_v1, -inf  ;;  %v15_v6 = vld [vmem:[%s181_s1 + $0x8] sm:$0xff]  ;;  %v41_v10 = vlaneseq  ;;  %v142_v17 = vmov 0.003125  }
   0x4   :  { %vm74_vm3 = vcmask 7168   ;;  %s143_s0 = smov [#allocation2]   ;;  %vm88_vm4 = vcmask 0  }
   0x5   :  { %v42_v15 = vand.u32 127, %v41_v10  ;;  %s96_s1 = sshll.u32 %s143_s0, 4  ;;  %s97_s1 = int_to_ptr.vmem [resolvable:$true] %s96_s1 }
   0x6   :  { %s119_s18 = scalar_lea.vmem %s97_s1, 16  ;;  %s123_s19 = scalar_lea.vmem %s97_s1, 32 }
   0x7   :  { %21 = vmax.xlane.f32.xlu0 %v20_v5  ;;  %47 = vperm.xlu1 %109, %v15_v6   ;;  %p120_p0 = scmp.ne.s32.totalorder %s97_s1, %s119_s18  ;;  %p124_p1 = scmp.lt.s32.totalorder %s97_s1, %s97_s1 }
   0x8   :  { %p125_p2 = scmp.lt.s32.totalorder %s123_s19, %s119_s18 }
   0xa   :  { %p126_p3 = por %p125_p2, %p124_p1 }
   0xc   :  { %p127_p4 = pnand %p126_p3, %p120_p0 }
  0x7e   :  { %v45_v13 = vpop.permute.xlu1 %44 }
  0x7f   :  { %vm49_vm1 = vcmp.eq.s32.totalorder %v42_v15, %v45_v13 }
  0x80   :  { %v51_v18 = vsel %vm49_vm1, 0.903125, %v142_v17 }
  0x81   :  { %v53_v19 = vmul.f32 %v51_v18, %v12_v0 }
  0x82   :  { %v48_v16 = vpop.permute.xlu1 %47 }
  0x83   :  { %vm50_vm2 = vcmp.eq.s32.totalorder %v42_v15, %v48_v16  ;;  %v55_v23 = vsel %vm16_vm0, %v53_v19, 0.0 }
  0x84   :  { %v52_v21 = vsel %vm50_vm2, 0.903125, %v142_v17 }
  0x85   :  { %v54_v24 = vmul.f32 %v52_v21, %v13_v1 }
  0x87   :  { %v58_v27 = vsel %vm16_vm0, %v54_v24, 0.0 }
  0x8c   :  { %v19_v7 = vpop.xlane.xlu0 %18 }
  0x8d   :  { %v23_v8 = vsub.f32 %v12_v0, %v19_v7 }
  0x8f   :  { %v25_v9 = vmul.f32 1.442695, %v23_v8 }
  0x90   :  { %v22_v11 = vpop.xlane.xlu0 %21 }
  0x91   :  { %111 = vpow2.f32 %v25_v9  ;;  %v24_v12 = vsub.f32 %v13_v1, %v22_v11 }
  0x93   :  { %v27_v14 = vmul.f32 1.442695, %v24_v12 }
  0x95   :  { %113 = vpow2.f32 %v27_v14 }
  0x9e   :  { %v112_v20 = vpop.eup %111 }
  0x9f   :  { %v29_v22 = vsel %vm16_vm0, %v112_v20, 0.0 }
  0xa0   :  { %30 = vadd.xlane.f32.xlu0 %v29_v22 }
  0xa2   :  { %v114_v25 = vpop.eup %113 }
  0xa3   :  { %v32_v26 = vsel %vm16_vm0, %v114_v25, 0.0 }
  0xa4   :  { %33 = vadd.xlane.f32.xlu1 %v32_v26  ;;  %56 = vadd.xlane.f32.xlu0 %v55_v23 }
  0xa8   :  { %59 = vadd.xlane.f32.xlu0 %v58_v27 }
 0x129   :  { %v31_v28 = vpop.xlane.xlu0 %30 }
 0x12a   :  { %115 = vlog2.f32 %v31_v28 }
 0x12d   :  { %v34_v29 = vpop.xlane.xlu1 %33  ;;  %v57_v32 = vpop.xlane.xlu0 %56 }
 0x12e   :  { %117 = vlog2.f32 %v34_v29 }
 0x131   :  { %v60_v38 = vpop.xlane.xlu0 %59 }
 0x137   :  { %v116_v30 = vpop.eup %115 }
 0x138   :  { %v36_v31 = vmul.f32 0.6931472, %v116_v30 }
 0x13a   :  { %v39_v33 = vadd.f32 %v36_v31, %v19_v7 }
 0x13b   :  { %v118_v34 = vpop.eup %117 }
 0x13c   :  { %v38_v35 = vmul.f32 0.6931472, %v118_v34  ;;  %v61_v36 = vsub.f32 %v39_v33, %v57_v32 }
 0x13e   :  { %v40_v37 = vadd.f32 %v38_v35, %v22_v11  ;;  %v75_v40 = vsel %vm74_vm3, %v61_v36, 0.0 }
 0x140   :  { %v62_v39 = vsub.f32 %v40_v37, %v60_v38 }
 0x142   :  { %v76_v41 = vsel %vm74_vm3, %v62_v39, 0.0 }
 0x143   :  { %v77_v42 = vadd.f32 %v76_v41, %v75_v40 }
 0x145   :  { %78 = vadd.xlane.f32.xlu0 %v77_v42 }
 0x1ce   :  { %v79_v43 = vpop.xlane.xlu0 %78 }
 0x1cf   :  { %v80_v44 = vrot.slane %v79_v43, 4 }
 0x1d1   :  { %v81_v45 = vadd.f32 %v80_v44, %v79_v43 }
 0x1d3   :  { %v82_v46 = vrot.slane %v81_v45, 2 }
 0x1d5   :  { %v83_v47 = vadd.f32 %v82_v46, %v81_v45 }
 0x1d7   :  { %v84_v48 = vrot.slane %v83_v47, 1 }
 0x1d9   :  { %v85_v49 = vadd.f32 %v84_v48, %v83_v47 }
 0x1db   :  { %104 = vpush %v85_v49 }
 0x20c   :  { %s105_s17 = spop %104 }
 0x20d   :  { %v87_v50 = vstv %s105_s17 }
 0x20e   :  { %89 = vst.msk [vmem:[#allocation2] sm:$0x1] %vm88_vm4, %v87_v50 }
 0x20f   :  { %130 = shalt.err (!%p127_p4)
}
 0x210   :  { %99 = dma.vmem_to_hbm [thread:$0]  %s97_s1, 16, %s182_s2, [#allocation3]  }
 0x211   :  { %139 = dma.done.wait [#allocation3], 16  }
 0x212   :  { %140 = vsyncadd [#allocation3], 4294967280 }
 0x213   :  { %103 = vsyncpa [#allocation3], 1 }

</bundles_post_ra>
